<compile_context>
chip_gen: v5e
topology: v5e:2x2
jax: 0.10.0
libtpu: 0.0.40
codegen_flags: <defaults>
</compile_context>

<pallas_src>
import itertools

import numpy as np
import jax
import jax.numpy as jnp
from jax import lax
from jax.experimental import pallas as pl
from jax.experimental.pallas import tpu as pltpu

CODON_CHANNELS = 64                    # 4**3 codons
SENTINEL = 1 << 10                     # "invalid codon" marker; never matches a lane index
DEFAULT_BLOCK_BYTES = 4 * 1024 * 1024  # target bytes of one output VMEM block


def build_codon_weight() -> jnp.ndarray:
    """Deterministic (64, 1, 3, 4) one-hot codon filters, same as the PyTorch init."""
    w = np.zeros((CODON_CHANNELS, 1, 3, 4), dtype=np.float32)
    for c, idx in enumerate(itertools.product(range(4), repeat=3)):
        for j in range(3):
            w[c, 0, j, idx[j]] = 1.0
    return jnp.asarray(w)


def codon_expand_kernel(codon_ref, o_ref):
    # codon_ref: (1, TR, F)    int32 codon indices (frame-major, F positions folded per row)
    # o_ref:     (1, TR, F*64) f32; one-hot expansion == relu(conv(x) - 2), regrouped
    cp = codon_ref[0]                                            # (TR, F)
    tr, f = cp.shape
    lane = lax.broadcasted_iota(jnp.int32, (tr, f * CODON_CHANNELS), 1)
    hit = lane == cp[:, 0:1]                                     # folded position 0
    for j in range(1, f):                                        # remaining folded positions
        hit = jnp.logical_or(hit, lane == cp[:, j:j + 1] + j * CODON_CHANNELS)
    o_ref[0] = jnp.where(hit, 1.0, 0.0).astype(o_ref.dtype)


def _pick_tile_rows(rows: int, out_cols: int, block_bytes: int) -> int:
    """Largest multiple-of-8 row tile whose f32 output block fits the byte budget."""
    budget = max(8, (block_bytes // (out_cols * 4)) // 8 * 8)
    return rows if rows <= budget else budget


def codon_transformer_forward(x: jnp.ndarray, *, tile_rows: int | None = None,
                              block_bytes: int = DEFAULT_BLOCK_BYTES) -> jnp.ndarray:
    """x: (N, 1, L, 4) float32 one-hot DNA -> (N, 1, P, 64) float32.

    Matches CodonTransformer.forward exactly for rows that are one-hot or all
    zero (the module's input domain: one-hot nucleotides + zero padding rows).
    """
    n, c, seq_len, w4 = x.shape
    assert c == 1 and w4 == 4, "expected NCHW input (N, 1, L, 4)"

    mod_len = seq_len % 3
    pad = (2 - mod_len) % 3
    hp = seq_len + pad
    p = hp - 2                     # conv output length, always a multiple of 3
    if p <= 0:
        raise ValueError("sequence too short: need at least one full codon window")
    m = p // 3

    xs = jnp.pad(x[:, 0], ((0, 0), (0, pad), (0, 0)))            # (N, Hp, 4)

    # --- tiny XLA glue on 4-16 B/position data (vs 256 B/position of output) ---
    # nucleotide index + row validity; exact for one-hot / all-zero rows.
    nt_w = jnp.arange(4, dtype=xs.dtype)
    idx = jnp.einsum('nhk,k->nh', xs, nt_w).astype(jnp.int32)    # (N, Hp)
    cnt = jnp.sum(xs, axis=-1).astype(jnp.int32)                 # 1 = real base, 0 = padding row
    a, b, d = idx[:, 0:p], idx[:, 1:p + 1], idx[:, 2:p + 2]
    ok = (cnt[:, 0:p] + cnt[:, 1:p + 1] + cnt[:, 2:p + 2]) == 3
    codon = jnp.where(ok, 16 * a + 4 * b + d, SENTINEL)          # (N, P) int32

    # Reading-frame regroup on the small index array so the kernel writes the
    # final layout directly: fm[k*M + mm] = codon[3*mm + k].
    codon_fm = codon.reshape(n, m, 3).transpose(0, 2, 1).reshape(n, p)

    # --- lane-dense folding + VMEM-budgeted tiling ------------------------------
    fold = 2 if p % 2 == 0 else 1          # 2 positions/row -> 128-lane unmasked stores
    out_cols = fold * CODON_CHANNELS
    rows = p // fold
    if tile_rows is None:
        tr = _pick_tile_rows(rows, out_cols, block_bytes)
    else:
        tr = rows if rows <= tile_rows else max(8, (tile_rows // 8) * 8)
    num_tiles = pl.cdiv(rows, tr)
    rows_pad = num_tiles * tr
    codon_fm = jnp.pad(codon_fm, ((0, 0), (0, rows_pad * fold - p)),
                       constant_values=SENTINEL)
    codon_in = codon_fm.reshape(n, rows_pad, fold)               # (N, rows_pad, F) int32

    out3 = pl.pallas_call(
        codon_expand_kernel,
        out_shape=jax.ShapeDtypeStruct((n, rows, out_cols), jnp.float32),
        grid=(n, num_tiles),
        in_specs=[pl.BlockSpec((1, tr, fold), lambda i, t: (i, t, 0))],
        out_specs=pl.BlockSpec((1, tr, out_cols), lambda i, t: (i, t, 0)),
        compiler_params=pltpu.CompilerParams(
            dimension_semantics=("parallel", "parallel")),
        cost_estimate=pl.CostEstimate(
            flops=int(n) * int(p) * CODON_CHANNELS,
            transcendentals=0,
            bytes_accessed=int(codon_in.size) * 4 + int(n) * int(rows) * out_cols * 4),
    )(codon_in)                                                  # (N, rows, F*64)

    # Row-major (rows, F*64) flattens identically to (P, 64): free reshape.
    return out3.reshape(n, 1, p, CODON_CHANNELS)


def codon_transformer_ref(x: jnp.ndarray) -> jnp.ndarray:
    """Pure-JAX reference reproducing the PyTorch forward exactly (conv, -2, relu, regroup)."""
    n, _, seq_len, _ = x.shape
    pad = (2 - seq_len % 3) % 3
    xs = jnp.pad(x, ((0, 0), (0, 0), (0, pad), (0, 0)))[:, 0]    # (N, Hp, 4)
    p = seq_len + pad - 2
    w = build_codon_weight()[:, 0]                               # (64, 3, 4)
    scores = jnp.zeros((n, CODON_CHANNELS, p), jnp.float32)
    for j in range(3):
        scores = scores + jnp.einsum('npk,ck->ncp', xs[:, j:j + p, :], w[:, j, :])
    y = jnp.maximum(scores - 2.0, 0.0)                           # (N, 64, P)
    m = p // 3
    y = y.reshape(n, CODON_CHANNELS, m, 3).transpose(0, 1, 3, 2)   # (N, 64, 3, M)
    y = y.reshape(n, 1, CODON_CHANNELS, p).transpose(0, 1, 3, 2)   # (N, 1, P, 64)
    return y


if __name__ == "__main__":
    key = jax.random.PRNGKey(0)
    n = 2
    # (L, tile_rows): exercise pad=1/2/0, odd/even P (64- vs 128-lane stores),
    # auto tile sizing, and multi-tile grids with a partial final output block.
    configs = [
        (16, None),    # pad=1, P=15 (odd)  -> fold=1, auto tile, single tile
        (21, None),    # pad=2, P=21 (odd)  -> fold=1, auto tile, single tile
        (20, None),    # pad=0, P=18 (even) -> fold=2, auto tile, single tile
        (250, 64),     # P=249 (odd)  -> fold=1, 4 tiles, partial last output block
        (260, 64),     # P=258 (even) -> fold=2, 3 tiles, partial last output block
        (4096, None),  # pad=2, P=4096... -> larger auto-tiled case, zero-padded tail rows
    ]
    for i, (L, trows) in enumerate(configs):
        key, sub = jax.random.split(key)
        nts = jax.random.randint(sub, (n, L), 0, 4)
        x = jax.nn.one_hot(nts, 4, dtype=jnp.float32)[:, None, :, :]   # (N, 1, L, 4)
        if L >= 64:
            # zero out a trailing chunk of one sequence to mimic ContigNet's
            # zero-padded variable-length contigs (all-zero rows inside x).
            x = x.at[0, 0, L - 17:, :].set(0.0)
        out = jax.block_until_ready(codon_transformer_forward(x, tile_rows=trows))
        ref = codon_transformer_ref(x)
        assert out.shape == ref.shape, (L, out.shape, ref.shape)
        assert jnp.allclose(out, ref, atol=1e-6), f"mismatch at config {i} (L={L})"
    print("KERNEL_OK")
</pallas_src>

<mosaic_0001>
module attributes {stable_mosaic.version = 11 : i64} {
  func.func @codon_expand_kernel(%arg0: i32, %arg1: i32, %arg2: memref<1x15x1xi32, #tpu.memory_space<vmem>>, %arg3: memref<1x15x64xf32, #tpu.memory_space<vmem>>) attributes {dimension_semantics = [#tpu.dimension_semantics<parallel>, #tpu.dimension_semantics<parallel>], iteration_bounds = array<i64: 2, 1>, scalar_prefetch = 0 : i64, scratch_operands = 0 : i64, tpu.core_type = #tpu.core_type<tc>, window_params = [{transform_indices = @transform_0, window_bounds = array<i64: 1, 15, 1>}, {transform_indices = @transform_1, window_bounds = array<i64: 1, 15, 64>}]} {
    %c0 = arith.constant 0 : index
    %c0_0 = arith.constant 0 : index
    %c0_1 = arith.constant 0 : index
    %0 = vector.load %arg2[%c0, %c0_0, %c0_1] : memref<1x15x1xi32, #tpu.memory_space<vmem>>, vector<1x15x1xi32>
    %1 = vector.shape_cast %0 : vector<1x15x1xi32> to vector<15x1xi32>
    %2 = tpu.iota {dimensions = array<i32: 1>} : vector<15x64xi32>
    %3 = vector.broadcast %1 : vector<15x1xi32> to vector<15x64xi32>
    %4 = arith.cmpi eq, %2, %3 : vector<15x64xi32>
    %cst = arith.constant 1.000000e+00 : f32
    %cst_2 = arith.constant 0.000000e+00 : f32
    %5 = vector.broadcast %cst : f32 to vector<15x64xf32>
    %6 = vector.broadcast %cst_2 : f32 to vector<15x64xf32>
    %7 = arith.select %4, %5, %6 : vector<15x64xi1>, vector<15x64xf32>
    %c0_3 = arith.constant 0 : index
    %c0_4 = arith.constant 0 : index
    %c0_5 = arith.constant 0 : index
    %8 = vector.load %arg3[%c0_3, %c0_4, %c0_5] : memref<1x15x64xf32, #tpu.memory_space<vmem>>, vector<1x15x64xf32>
    %9 = vector.shape_cast %8 : vector<1x15x64xf32> to vector<15x64xf32>
    %10 = vector.shape_cast %7 : vector<15x64xf32> to vector<1x15x64xf32>
    tpu.vector_store %arg3[%c0_3, %c0_4, %c0_5], %10 {strides = array<i32>} : memref<1x15x64xf32, #tpu.memory_space<vmem>>, vector<1x15x64xf32>,
    return
  }
  func.func @transform_0(%arg0: i32, %arg1: i32) -> (i32, i32, i32) {
    %c0_i32 = arith.constant 0 : i32
    %c0_i32_0 = arith.constant 0 : i32
    return %arg0, %arg1, %c0_i32 : i32, i32, i32
  }
  func.func @transform_1(%arg0: i32, %arg1: i32) -> (i32, i32, i32) {
    %c0_i32 = arith.constant 0 : i32
    %c0_i32_0 = arith.constant 0 : i32
    return %arg0, %arg1, %c0_i32 : i32, i32, i32
  }
}

</mosaic_0001>

<bundles_post_ra>
// kernel: tpu_custom_call.1
= control target key start
LH: loop header
LB: loop body
LE: loop exit
PB: predicated region body
PF: predicated region fallthrough
CT: control target
= control target key end

     0   :  { %s337_s6 = smov 0   ;;  %s339_s7 = smov 0   ;;  %s370_s0 = inlined_call_operand.vmem [shape: s32[2,15,1], index: 0, kind: input, shape index: {}]   ;;  %s371_s1 = inlined_call_operand.vmem [shape: f32[2,15,64], index: 1, kind: output, shape index: {}]  }
   0x1   :  { %s341_s8 = smov 0  }
   0x2 LB: > { %s23_s9 = sadd.s32 1, %s319_s7  ;;  %p265_p0 = scmp.ge.s32.totalorder %s323_s8, 1  ;;  %s323_s8 = sphi %s341_s8, %s11_s8   ;;  %s319_s7 = sphi %s339_s7, %s373_s7   ;;  %s315_s6 = sphi %s337_s6, %s372_s6  }
   0x3   : > { %p25_p1 = scmp.ge.s32.totalorder %s23_s9, 2  ;;  %p108_p2 = scmp.lt.s32.totalorder %s323_s8, 3 }
   0x5   : > { %s375_s9 = smov (%p25_p1, %s23_s9), 0  ;;  %p109_p3 = pnand %p265_p0, %p108_p2 }
   0x6   : > { %p137_p4 = scmp.lt.s32.totalorder (!%p109_p3), %s315_s6, 1 }
   0x7   : > { %112 = sbr.rel (%p109_p3) target bundleno = 142 (0x8e), region = 24 }
   0xc   : > { %v325_v0 = vmov 0   ;;  %s377_s6 = smov (!%p137_p4, %s315_s6), 1  ;;  %v158_v3 = vlaneseq  ;;  %vm170_vm0 = vcmask 523264   ;;  %v326_v6 = vmov 0.0  }
   0xd   : > { %300 = vset.pattern.permute.xlu0 %v325_v0  ;;  %s272_s10 = sshll.u32 %s377_s6, 4  ;;  %vm172_vm2 = vcmask 522240  }
   0xe   : > { %s144_s13 = scalar_lea.vmem %s370_s0, %s272_s10  ;;  %v159_v4 = vand.u32 127, %v158_v3  ;;  %s154_s16 = scalar_lea.vmem %s371_s1, %s272_s10 }
   0xf   : > { %v156_v1 = vld [vmem:[%s144_s13] sm:$0xff]  ;;  %v157_v2 = vld [vmem:[%s144_s13 + $0x8] sm:$0x7f] }
  0x10   : > { %161 = vperm.xlu0 %300, %v156_v1  }
  0x18   : > { %164 = vperm.xlu0 %300, %v157_v2  }
  0x82   : > { %v162_v5 = vpop.permute.xlu0 %161 }
  0x83   : > { %vm166_vm1 = vcmp.eq.s32.totalorder %v159_v4, %v162_v5 }
  0x84   : > { %v168_v7 = vsel %vm166_vm1, 1.0, %v326_v6 }
  0x85   : > { %171 = vst.msk [vmem:[%s154_s16] sm:$0xff] %vm170_vm0, %v168_v7 }
  0x8a   : > { %v165_v8 = vpop.permute.xlu0 %164 }
  0x8b   : > { %vm167_vm3 = vcmp.eq.s32.totalorder %v159_v4, %v165_v8 }
  0x8c   : > { %v169_v9 = vsel %vm167_vm3, 1.0, %v326_v6 }
  0x8d   : > { %173 = vst.msk [vmem:[%s154_s16 + $0x8] sm:$0x7f] %vm172_vm2, %v169_v9 }
  0x8e PF: > { %s11_s8 = sadd.s32 1, %s323_s8   ;;  %s372_s6 = smov %s319_s7 }
  0x8f   : > { %p8_p5 = scmp.ge.s32.totalorder %s11_s8, 4   ;;  %s373_s7 = smov %s375_s9 }
  0x91   :  { %10 = sbr.rel (!%p8_p5) target bundleno = 2 (0x2), region = 54 }

</bundles_post_ra>
